<compile_context>
chip_gen: v6e
topology: v6e:2x2x1
jax: 0.10.0
libtpu: 0.0.40
codegen_flags: <defaults>
</compile_context>

<pallas_src>
import jax
import jax.numpy as jnp
from jax.experimental import pallas as pl
from jax.experimental.pallas import tpu as pltpu


IN_FEATURES = 32 * 32 * 3   # 3072
OUT_FEATURES = 101
OUT_PADDED = 128            # lane-dense output width (multiple of 128)
SUBLANE = 8                 # f32 sublane rows


def linear_kernel(x_ref, w_ref, b_ref, o_ref):
    """One grid step: o_tile = x_tile @ w + b.

    x_ref: (TB, 3072)      current batch tile (VMEM, pipelined)
    w_ref: (3072, 128)     pre-transposed, zero-padded weight (VMEM, resident)
    b_ref: (1, 128)        zero-padded bias (VMEM, resident)
    o_ref: (TB, 128)       lane-dense output tile (VMEM)
    """
    o_ref[...] = (
        jnp.dot(x_ref[...], w_ref[...], preferred_element_type=jnp.float32)
        + b_ref[...]
    ).astype(o_ref.dtype)


def pack_linear_params(weight, bias):
    """Pack PyTorch-convention Linear params once, outside the hot path.

    weight: (101, 3072) -> (3072, 128) transposed + zero-padded columns
    bias:   (101,)      -> (1, 128)    zero-padded row
    """
    w_packed = (
        jnp.zeros((IN_FEATURES, OUT_PADDED), weight.dtype)
        .at[:, :OUT_FEATURES]
        .set(weight.T)
    )
    b_packed = (
        jnp.zeros((1, OUT_PADDED), bias.dtype)
        .at[0, :OUT_FEATURES]
        .set(bias)
    )
    return w_packed, b_packed


def _round_up(n, m):
    return ((n + m - 1) // m) * m


def lazynet_forward(x_nchw, w_packed, b_packed, *, tb=256):
    """x_nchw:   (B, 3, 32, 32) float32
       w_packed: (3072, 128)    float32  (from pack_linear_params)
       b_packed: (1, 128)       float32
       tb:       batch tile size (rows per grid step); 256 is v5e-safe,
                 larger (512-1024) is fine on v6e/v7x.
       returns   (B, 101)       float32
    """
    B = x_nchw.shape[0]
    # torch x.view(-1, 3072) on NCHW == row-major flatten of (C, H, W)
    x_flat = x_nchw.reshape(B, IN_FEATURES)

    # Pick the tile size: no larger than the (sublane-rounded) batch, and a
    # multiple of 8 so loads/stores are full vregs.
    tb = min(_round_up(tb, SUBLANE), _round_up(B, SUBLANE))
    b_pad = _round_up(B, tb)

    if b_pad != B:
        x_flat = jnp.zeros((b_pad, IN_FEATURES), x_flat.dtype).at[:B].set(x_flat)

    grid = (b_pad // tb,)

    out_padded = pl.pallas_call(
        linear_kernel,
        out_shape=jax.ShapeDtypeStruct((b_pad, OUT_PADDED), jnp.float32),
        grid=grid,
        in_specs=[
            # Batch tiles, streamed + double-buffered by the pipeline.
            pl.BlockSpec((tb, IN_FEATURES), lambda i: (i, 0)),
            # Weight / bias: same block every step -> DMA'd once, resident.
            pl.BlockSpec((IN_FEATURES, OUT_PADDED), lambda i: (0, 0)),
            pl.BlockSpec((1, OUT_PADDED), lambda i: (0, 0)),
        ],
        out_specs=pl.BlockSpec((tb, OUT_PADDED), lambda i: (i, 0)),
        compiler_params=pltpu.CompilerParams(
            dimension_semantics=("parallel",),
        ),
    )(x_flat, w_packed, b_packed)

    # Slice back to the logical (B, 101) shape. For large B a consumer could
    # take the padded result directly (cols 101..127 are exact zeros).
    return out_padded[:B, :OUT_FEATURES]


if __name__ == "__main__":
    key = jax.random.PRNGKey(0)
    kx, kw, kb = jax.random.split(key, 3)

    # Deterministic synthetic parameters (shapes match nn.Linear(3072, 101)).
    bound = 1.0 / (IN_FEATURES ** 0.5)
    weight = jax.random.uniform(
        kw, (OUT_FEATURES, IN_FEATURES), jnp.float32, -bound, bound
    )
    bias = jax.random.uniform(kb, (OUT_FEATURES,), jnp.float32, -bound, bound)

    # Pack once (not per forward call).
    w_packed, b_packed = pack_linear_params(weight, bias)
    w_packed = jax.block_until_ready(w_packed)
    b_packed = jax.block_until_ready(b_packed)

    # Small batch, CIFAR-like input implied by 32*32*3.
    x = jax.random.normal(kx, (2, 3, 32, 32), jnp.float32)

    out = lazynet_forward(x, w_packed, b_packed)
    out = jax.block_until_ready(out)

    # Reference check in plain JAX.
    ref = x.reshape(2, IN_FEATURES) @ weight.T + bias
    assert out.shape == (2, OUT_FEATURES)
    assert jnp.allclose(out, ref, atol=1e-4, rtol=1e-4)

    print("KERNEL_OK")
</pallas_src>

<mosaic_0001>
module attributes {stable_mosaic.version = 11 : i64} {
  func.func @linear_kernel(%arg0: i32, %arg1: memref<8x3072xf32, #tpu.memory_space<vmem>>, %arg2: memref<3072x128xf32, #tpu.memory_space<vmem>>, %arg3: memref<1x128xf32, #tpu.memory_space<vmem>>, %arg4: memref<8x128xf32, #tpu.memory_space<vmem>>) attributes {dimension_semantics = [#tpu.dimension_semantics<parallel>], iteration_bounds = array<i64: 1>, scalar_prefetch = 0 : i64, scratch_operands = 0 : i64, tpu.core_type = #tpu.core_type<tc>, window_params = [{transform_indices = @transform_0, window_bounds = array<i64: 8, 3072>}, {pipeline_mode = #tpu.pipeline_mode<synchronous>, transform_indices = @transform_1, window_bounds = array<i64: 3072, 128>}, {pipeline_mode = #tpu.pipeline_mode<synchronous>, transform_indices = @transform_2, window_bounds = array<i64: 1, 128>}, {transform_indices = @transform_3, window_bounds = array<i64: 8, 128>}]} {
    %c0 = arith.constant 0 : index
    %c0_0 = arith.constant 0 : index
    %0 = vector.load %arg1[%c0, %c0_0] : memref<8x3072xf32, #tpu.memory_space<vmem>>, vector<8x3072xf32>
    %c0_1 = arith.constant 0 : index
    %c0_2 = arith.constant 0 : index
    %1 = vector.load %arg2[%c0_1, %c0_2] : memref<3072x128xf32, #tpu.memory_space<vmem>>, vector<3072x128xf32>
    %cst = arith.constant dense<0.000000e+00> : vector<8x128xf32>
    %2 = tpu.matmul %0, %1, %cst {dimension_numbers = #tpu.dot_dimension_numbers<[1], [0], [0], [1], [0, 0, 1, 1], [], []>} : vector<8x3072xf32>, vector<3072x128xf32>, vector<8x128xf32> -> vector<8x128xf32>
    %c0_3 = arith.constant 0 : index
    %c0_4 = arith.constant 0 : index
    %3 = vector.load %arg3[%c0_3, %c0_4] : memref<1x128xf32, #tpu.memory_space<vmem>>, vector<1x128xf32>
    %4 = vector.broadcast %3 : vector<1x128xf32> to vector<8x128xf32>
    %5 = arith.addf %2, %4 : vector<8x128xf32>
    %c0_5 = arith.constant 0 : index
    %c0_6 = arith.constant 0 : index
    %6 = vector.load %arg4[%c0_5, %c0_6] : memref<8x128xf32, #tpu.memory_space<vmem>>, vector<8x128xf32>
    tpu.vector_store %arg4[%c0_5, %c0_6], %5 {strides = array<i32>} : memref<8x128xf32, #tpu.memory_space<vmem>>, vector<8x128xf32>,
    return
  }
  func.func @transform_0(%arg0: i32) -> (i32, i32) {
    %c0_i32 = arith.constant 0 : i32
    %c0_i32_0 = arith.constant 0 : i32
    return %arg0, %c0_i32 : i32, i32
  }
  func.func @transform_1(%arg0: i32) -> (i32, i32) {
    %c0_i32 = arith.constant 0 : i32
    %c0_i32_0 = arith.constant 0 : i32
    %c0_i32_1 = arith.constant 0 : i32
    return %c0_i32, %c0_i32_0 : i32, i32
  }
  func.func @transform_2(%arg0: i32) -> (i32, i32) {
    %c0_i32 = arith.constant 0 : i32
    %c0_i32_0 = arith.constant 0 : i32
    %c0_i32_1 = arith.constant 0 : i32
    return %c0_i32, %c0_i32_0 : i32, i32
  }
  func.func @transform_3(%arg0: i32) -> (i32, i32) {
    %c0_i32 = arith.constant 0 : i32
    %c0_i32_0 = arith.constant 0 : i32
    return %arg0, %c0_i32 : i32, i32
  }
}

</mosaic_0001>

<bundles_post_ra>
// kernel: tpu_custom_call.1
= control target key start
LH: loop header
LB: loop body
LE: loop exit
PB: predicated region body
PF: predicated region fallthrough
CT: control target
= control target key end

     0   :  { %8 = vsyncpa [#allocation3], 0  ;;  %s1875_s0 = inlined_call_operand.hbm [shape: f32[8,3072], index: 0, kind: input, shape index: {}]   ;;  %s1876_s1 = inlined_call_operand.hbm [shape: f32[3072,128], index: 1, kind: input, shape index: {}]   ;;  %s1877_s2 = inlined_call_operand.hbm [shape: f32[1,128], index: 2, kind: input, shape index: {}]   ;;  %s1878_s3 = inlined_call_operand.hbm [shape: f32[8,128], index: 3, kind: output, shape index: {}]  }
   0x1   :  { %9 = vsyncpa [#allocation6], 0 }
   0x2   :  { %10 = vsyncpa [#allocation4], 0  ;;  %s1837_s12 = smov [#allocation5]  }
   0x3   :  { %s26_s13 = sshll.u32 %s1837_s12, 4  ;;  %s27_s13 = int_to_ptr.vmem [resolvable:$true] %s26_s13 }
   0x4   :  { %s1759_s14 = scalar_lea.vmem %s27_s13, 49152  ;;  %p1764_p1 = scmp.lt.s32.totalorder %s27_s13, %s27_s13 }
   0x5   :  { %p1760_p0 = scmp.ne.s32.totalorder %s27_s13, %s1759_s14  ;;  %p1765_p2 = scmp.lt.s32.totalorder %s1759_s14, %s1759_s14 }
   0x7   :  { %p1766_p3 = por %p1765_p2, %p1764_p1 }
   0x9   :  { %p1767_p4 = pnand %p1766_p3, %p1760_p0 }
   0xb   :  { %1770 = shalt.err (!%p1767_p4)
}
   0xc   :  { %s1838_s15 = smov 128   ;;  %s1839_s16 = smov 8  }
   0xd   :  { %32 = dma.hbm_to_vmem [thread:$0]  %s1876_s1, 49152, %s27_s13, [#allocation6], %s1838_s15, %s1838_s15, %s1839_s16  }
   0xe   :  { %s1840_s19 = smov [#allocation2]   ;;  %s1841_s21 = smov [#allocation7]  }
   0xf   :  { %s17_s20 = sshll.u32 %s1840_s19, 4  ;;  %s39_s22 = sshll.u32 %s1841_s21, 4  ;;  %s18_s20 = int_to_ptr.vmem [resolvable:$true] %s17_s20  ;;  %s40_s22 = int_to_ptr.vmem [resolvable:$true] %s39_s22 }
  0x10   :  { %s1779_s23 = scalar_lea.vmem %s18_s20, 3072  ;;  %p1784_p6 = scmp.lt.s32.totalorder %s18_s20, %s18_s20 }
  0x11   :  { %p1780_p5 = scmp.ne.s32.totalorder %s18_s20, %s1779_s23  ;;  %p1785_p7 = scmp.lt.s32.totalorder %s1779_s23, %s1779_s23 }
  0x13   :  { %p1786_p8 = por %p1785_p7, %p1784_p6 }
  0x15   :  { %p1787_p9 = pnand %p1786_p8, %p1780_p5 }
  0x17   :  { %1790 = shalt.err (!%p1787_p9)
}
  0x18   :  { %20 = dma.hbm_to_vmem [thread:$0]  %s1875_s0, 3072, %s18_s20, [#allocation3]  }
  0x19   :  { %s1799_s26 = scalar_lea.vmem %s40_s22, 16  ;;  %s1803_s1 = scalar_lea.vmem %s40_s22, 32 }
  0x1a   :  { %p1800_p10 = scmp.ne.s32.totalorder %s40_s22, %s1799_s26  ;;  %p1804_p11 = scmp.lt.s32.totalorder %s40_s22, %s40_s22 }
  0x1b   :  { %p1805_p12 = scmp.lt.s32.totalorder %s1803_s1, %s1799_s26 }
  0x1d   :  { %p1806_p13 = por %p1805_p12, %p1804_p11 }
  0x1f   :  { %p1807_p0 = pnand %p1806_p13, %p1800_p10 }
  0x21   :  { %1810 = shalt.err (!%p1807_p0)
}
  0x22   :  { %42 = dma.hbm_to_vmem [thread:$0]  %s1877_s2, 16, %s40_s22, [#allocation6]  }
  0x23   :  { %1831 = dma.done.wait [#allocation3], 3072  }
  0x24   :  { %1832 = vsyncadd [#allocation3], 4294964224 }
  0x25   :  { %1833 = dma.done.wait [#allocation6], 49168  }
  0x26   :  { %1834 = vsyncadd [#allocation6], 4294918128  ;;  %v107_v0 = vld [vmem:[#allocation5 + $0xf8] sm:$0xff]  ;;  %v106_v4 = vld [vmem:[#allocation5 + $0xf0] sm:$0xff]  ;;  %s1842_s0 = smov [#allocation8]  }
  0x27   :  { %v139_v1 = vld [vmem:[#allocation5 + $0x1f8] sm:$0xff]  ;;  %1325 = vmatprep.subr.mxu0 %v107_v0  ;;  %v138_v5 = vld [vmem:[#allocation5 + $0x1f0] sm:$0xff]  ;;  %v105_v8 = vld [vmem:[#allocation5 + $0xe8] sm:$0xff]  ;;  %s1314_s2 = sshll.u32 %s1842_s0, 4  ;;  %s1315_s2 = int_to_ptr.vmem [resolvable:$true] %s1314_s2 }
  0x28   :  { %v91_v2 = vld [vmem:[#allocation5 + $0x78] sm:$0xff]  ;;  %1360 = vmatprep.subr.mxu1 %v139_v1  ;;  %v90_v6 = vld [vmem:[#allocation5 + $0x70] sm:$0xff]  ;;  %v137_v9 = vld [vmem:[#allocation5 + $0x1e8] sm:$0xff]  ;;  %s1811_s29 = scalar_lea.vmem %s1315_s2, 128  ;;  %p1816_p2 = scmp.lt.s32.totalorder %s1315_s2, %s1315_s2 }
  0x29   :  { %v123_v3 = vld [vmem:[#allocation5 + $0x178] sm:$0xff]  ;;  %1326 = vmatpush3.msra.mxu0 %v91_v2  ;;  %v122_v7 = vld [vmem:[#allocation5 + $0x170] sm:$0xff]  ;;  %v89_v10 = vld [vmem:[#allocation5 + $0x68] sm:$0xff]  ;;  %p1812_p1 = scmp.ne.s32.totalorder %s1315_s2, %s1811_s29  ;;  %p1817_p3 = scmp.lt.s32.totalorder %s1811_s29, %s1811_s29 }
  0x2a   :  { %1361 = vmatpush3.msra.mxu1 %v123_v3  ;;  %1327 = vmatprep.subr.mxu0 %v106_v4  ;;  %v121_v11 = vld [vmem:[#allocation5 + $0x168] sm:$0xff]  ;;  %v104_v12 = vld [vmem:[#allocation5 + $0xe0] sm:$0xff]  ;;  %v103_v16 = vld [vmem:[#allocation5 + $0xd8] sm:$0xff] }
  0x2b   :  { %1362 = vmatprep.subr.mxu1 %v138_v5  ;;  %1328 = vmatpush3.msra.mxu0 %v90_v6  ;;  %v136_v13 = vld [vmem:[#allocation5 + $0x1e0] sm:$0xff]  ;;  %v135_v17 = vld [vmem:[#allocation5 + $0x1d8] sm:$0xff]  ;;  %v102_v20 = vld [vmem:[#allocation5 + $0xd0] sm:$0xff]  ;;  %p1818_p4 = por %p1817_p3, %p1816_p2 }
  0x2c   :  { %1363 = vmatpush3.msra.mxu1 %v122_v7  ;;  %1329 = vmatprep.subr.mxu0 %v105_v8  ;;  %v88_v14 = vld [vmem:[#allocation5 + $0x60] sm:$0xff]  ;;  %v87_v18 = vld [vmem:[#allocation5 + $0x58] sm:$0xff]  ;;  %v134_v21 = vld [vmem:[#allocation5 + $0x1d0] sm:$0xff] }
  0x2d   :  { %1364 = vmatprep.subr.mxu1 %v137_v9  ;;  %v120_v15 = vld [vmem:[#allocation5 + $0x160] sm:$0xff]  ;;  %1330 = vmatpush3.msra.mxu0 %v89_v10  ;;  %v119_v19 = vld [vmem:[#allocation5 + $0x158] sm:$0xff]  ;;  %v86_v22 = vld [vmem:[#allocation5 + $0x50] sm:$0xff]  ;;  %p1819_p5 = pnand %p1818_p4, %p1812_p1 }
  0x2e   :  { %1365 = vmatpush3.msra.mxu1 %v121_v11  ;;  %1331 = vmatprep.subr.mxu0 %v104_v12  ;;  %v118_v23 = vld [vmem:[#allocation5 + $0x150] sm:$0xff]  ;;  %v101_v24 = vld [vmem:[#allocation5 + $0xc8] sm:$0xff]  ;;  %v100_v28 = vld [vmem:[#allocation5 + $0xc0] sm:$0xff] }
  0x2f   :  { %1366 = vmatprep.subr.mxu1 %v136_v13  ;;  %1332 = vmatpush3.msra.mxu0 %v88_v14  ;;  %v133_v25 = vld [vmem:[#allocation5 + $0x1c8] sm:$0xff]  ;;  %v132_v29 = vld [vmem:[#allocation5 + $0x1c0] sm:$0xff]  ;;  %v99_v32 = vld [vmem:[#allocation5 + $0xb8] sm:$0xff] }
  0x30   :  { %1367 = vmatpush3.msra.mxu1 %v120_v15  ;;  %1333 = vmatprep.subr.mxu0 %v103_v16  ;;  %v85_v26 = vld [vmem:[#allocation5 + $0x48] sm:$0xff]  ;;  %v84_v30 = vld [vmem:[#allocation5 + $0x40] sm:$0xff]  ;;  %v131_v33 = vld [vmem:[#allocation5 + $0x1b8] sm:$0xff] }
  0x31   :  { %1368 = vmatprep.subr.mxu1 %v135_v17  ;;  %1334 = vmatpush3.msra.mxu0 %v87_v18  ;;  %v117_v27 = vld [vmem:[#allocation5 + $0x148] sm:$0xff]  ;;  %v116_v31 = vld [vmem:[#allocation5 + $0x140] sm:$0xff]  ;;  %v83_v34 = vld [vmem:[#allocation5 + $0x38] sm:$0xff] }
  0x32   :  { %1369 = vmatpush3.msra.mxu1 %v119_v19  ;;  %1335 = vmatprep.subr.mxu0 %v102_v20  ;;  %v115_v35 = vld [vmem:[#allocation5 + $0x138] sm:$0xff]  ;;  %v98_v36 = vld [vmem:[#allocation5 + $0xb0] sm:$0xff]  ;;  %v97_v40 = vld [vmem:[#allocation5 + $0xa8] sm:$0xff] }
  0x33   :  { %1370 = vmatprep.subr.mxu1 %v134_v21  ;;  %1336 = vmatpush3.msra.mxu0 %v86_v22  ;;  %v130_v37 = vld [vmem:[#allocation5 + $0x1b0] sm:$0xff]  ;;  %v129_v41 = vld [vmem:[#allocation5 + $0x1a8] sm:$0xff]  ;;  %v96_v44 = vld [vmem:[#allocation5 + $0xa0] sm:$0xff] }
  0x34   :  { %1371 = vmatpush3.msra.mxu1 %v118_v23  ;;  %1337 = vmatprep.subr.mxu0 %v101_v24  ;;  %v82_v38 = vld [vmem:[#allocation5 + $0x30] sm:$0xff]  ;;  %v81_v42 = vld [vmem:[#allocation5 + $0x28] sm:$0xff]  ;;  %v128_v45 = vld [vmem:[#allocation5 + $0x1a0] sm:$0xff] }
  0x35   :  { %1372 = vmatprep.subr.mxu1 %v133_v25  ;;  %1338 = vmatpush3.msra.mxu0 %v85_v26  ;;  %v114_v39 = vld [vmem:[#allocation5 + $0x130] sm:$0xff]  ;;  %v113_v43 = vld [vmem:[#allocation5 + $0x128] sm:$0xff]  ;;  %v80_v46 = vld [vmem:[#allocation5 + $0x20] sm:$0xff] }
  0x36   :  { %1373 = vmatpush3.msra.mxu1 %v117_v27  ;;  %1339 = vmatprep.subr.mxu0 %v100_v28  ;;  %v112_v47 = vld [vmem:[#allocation5 + $0x120] sm:$0xff]  ;;  %v95_v48 = vld [vmem:[#allocation5 + $0x98] sm:$0xff]  ;;  %v94_v52 = vld [vmem:[#allocation5 + $0x90] sm:$0xff] }
  0x37   :  { %1374 = vmatprep.subr.mxu1 %v132_v29  ;;  %1340 = vmatpush3.msra.mxu0 %v84_v30  ;;  %v127_v49 = vld [vmem:[#allocation5 + $0x198] sm:$0xff]  ;;  %v126_v53 = vld [vmem:[#allocation5 + $0x190] sm:$0xff]  ;;  %v93_v56 = vld [vmem:[#allocation5 + $0x88] sm:$0xff] }
  0x38   :  { %1375 = vmatpush3.msra.mxu1 %v116_v31  ;;  %1341 = vmatprep.subr.mxu0 %v99_v32  ;;  %v79_v50 = vld [vmem:[#allocation5 + $0x18] sm:$0xff]  ;;  %v78_v54 = vld [vmem:[#allocation5 + $0x10] sm:$0xff]  ;;  %v125_v57 = vld [vmem:[#allocation5 + $0x188] sm:$0xff] }
  0x39   :  { %1376 = vmatprep.subr.mxu1 %v131_v33  ;;  %1342 = vmatpush3.msra.mxu0 %v83_v34  ;;  %v111_v51 = vld [vmem:[#allocation5 + $0x118] sm:$0xff]  ;;  %v110_v55 = vld [vmem:[#allocation5 + $0x110] sm:$0xff]  ;;  %v77_v58 = vld [vmem:[#allocation5 + $0x8] sm:$0xff] }
  0x3a   :  { %1377 = vmatpush3.msra.mxu1 %v115_v35  ;;  %1343 = vmatprep.subr.mxu0 %v98_v36  ;;  %v109_v59 = vld [vmem:[#allocation5 + $0x108] sm:$0xff]  ;;  %v92_v60 = vld [vmem:[#allocation5 + $0x80] sm:$0xff]  ;;  %v55_v2 = vld [vmem:[#allocation2 + $0x18] sm:$0xff] }
  0x3b   :  { %1378 = vmatprep.subr.mxu1 %v130_v37  ;;  %1344 = vmatpush3.msra.mxu0 %v82_v38  ;;  %v124_v61 = vld [vmem:[#allocation5 + $0x180] sm:$0xff]  ;;  %v53_v63 = vld [vmem:[#allocation2 + $0x8] sm:$0xff]  ;;  %v171_v3 = vld [vmem:[#allocation5 + $0x2f8] sm:$0xff] }
  0x3c   :  { %1379 = vmatpush3.msra.mxu1 %v114_v39  ;;  %1345 = vmatprep.subr.mxu0 %v97_v40  ;;  %v76_v62 = vld [vmem:[#allocation5] sm:$0xff]  ;;  %v203_v4 = vld [vmem:[#allocation5 + $0x3f8] sm:$0xff]  ;;  %v54_v5 = vld [vmem:[#allocation2 + $0x10] sm:$0xff] }
  0x3d   :  { %1380 = vmatprep.subr.mxu1 %v129_v41  ;;  %1346 = vmatpush3.msra.mxu0 %v81_v42  ;;  %v108_v0 = vld [vmem:[#allocation5 + $0x100] sm:$0xff]  ;;  %v155_v6 = vld [vmem:[#allocation5 + $0x278] sm:$0xff]  ;;  %v170_v8 = vld [vmem:[#allocation5 + $0x2f0] sm:$0xff] }
  0x3e   :  { %1381 = vmatpush3.msra.mxu1 %v113_v43  ;;  %1347 = vmatprep.subr.mxu0 %v96_v44  ;;  %v52_v1 = vld [vmem:[#allocation2] sm:$0xff]  ;;  %v187_v7 = vld [vmem:[#allocation5 + $0x378] sm:$0xff]  ;;  %v202_v9 = vld [vmem:[#allocation5 + $0x3f0] sm:$0xff] }
  0x3f   :  { %1382 = vmatprep.subr.mxu1 %v128_v45  ;;  %1348 = vmatpush3.msra.mxu0 %v80_v46  ;;  %v154_v10 = vld [vmem:[#allocation5 + $0x270] sm:$0xff]  ;;  %v169_v12 = vld [vmem:[#allocation5 + $0x2e8] sm:$0xff]  ;;  %v168_v16 = vld [vmem:[#allocation5 + $0x2e0] sm:$0xff] }
  0x40   :  { %1383 = vmatpush3.msra.mxu1 %v112_v47  ;;  %1349 = vmatprep.subr.mxu0 %v95_v48  ;;  %v186_v11 = vld [vmem:[#allocation5 + $0x370] sm:$0xff]  ;;  %v201_v13 = vld [vmem:[#allocation5 + $0x3e8] sm:$0xff]  ;;  %v200_v17 = vld [vmem:[#allocation5 + $0x3e0] sm:$0xff] }
  0x41   :  { %1384 = vmatprep.subr.mxu1 %v127_v49  ;;  %1350 = vmatpush3.msra.mxu0 %v79_v50  ;;  %v153_v14 = vld [vmem:[#allocation5 + $0x268] sm:$0xff]  ;;  %v152_v18 = vld [vmem:[#allocation5 + $0x260] sm:$0xff]  ;;  %v167_v20 = vld [vmem:[#allocation5 + $0x2d8] sm:$0xff] }
  0x42   :  { %1385 = vmatpush3.msra.mxu1 %v111_v51  ;;  %1351 = vmatprep.subr.mxu0 %v94_v52  ;;  %v185_v15 = vld [vmem:[#allocation5 + $0x368] sm:$0xff]  ;;  %v184_v19 = vld [vmem:[#allocation5 + $0x360] sm:$0xff]  ;;  %v199_v21 = vld [vmem:[#allocation5 + $0x3d8] sm:$0xff] }
  0x43   :  { %1386 = vmatprep.subr.mxu1 %v126_v53  ;;  %1352 = vmatpush3.msra.mxu0 %v78_v54  ;;  %v151_v22 = vld [vmem:[#allocation5 + $0x258] sm:$0xff]  ;;  %v166_v24 = vld [vmem:[#allocation5 + $0x2d0] sm:$0xff]  ;;  %v165_v28 = vld [vmem:[#allocation5 + $0x2c8] sm:$0xff] }
  0x44   :  { %1387 = vmatpush3.msra.mxu1 %v110_v55  ;;  %1353 = vmatprep.subr.mxu0 %v93_v56  ;;  %v183_v23 = vld [vmem:[#allocation5 + $0x358] sm:$0xff]  ;;  %v198_v25 = vld [vmem:[#allocation5 + $0x3d0] sm:$0xff]  ;;  %v197_v29 = vld [vmem:[#allocation5 + $0x3c8] sm:$0xff] }
  0x45   :  { %1388 = vmatprep.subr.mxu1 %v125_v57  ;;  %1354 = vmatpush3.msra.mxu0 %v77_v58  ;;  %v150_v26 = vld [vmem:[#allocation5 + $0x250] sm:$0xff]  ;;  %v149_v30 = vld [vmem:[#allocation5 + $0x248] sm:$0xff]  ;;  %v164_v32 = vld [vmem:[#allocation5 + $0x2c0] sm:$0xff] }
  0x46   :  { %1389 = vmatpush3.msra.mxu1 %v109_v59  ;;  %1355 = vmatprep.subr.mxu0 %v92_v60  ;;  %v182_v27 = vld [vmem:[#allocation5 + $0x350] sm:$0xff]  ;;  %v181_v31 = vld [vmem:[#allocation5 + $0x348] sm:$0xff]  ;;  %v196_v33 = vld [vmem:[#allocation5 + $0x3c0] sm:$0xff] }
  0x47   :  { %1390 = vmatprep.subr.mxu1 %v124_v61  ;;  %1356 = vmatpush3.msra.mxu0 %v76_v62  ;;  %v148_v34 = vld [vmem:[#allocation5 + $0x240] sm:$0xff]  ;;  %v163_v36 = vld [vmem:[#allocation5 + $0x2b8] sm:$0xff]  ;;  %v162_v40 = vld [vmem:[#allocation5 + $0x2b0] sm:$0xff] }
  0x48   :  { %531 = vmatprep.mubr.f32.mxu0 %v53_v63  ;;  %1391 = vmatpush3.msra.mxu1 %v108_v0  ;;  %v180_v35 = vld [vmem:[#allocation5 + $0x340] sm:$0xff]  ;;  %v195_v37 = vld [vmem:[#allocation5 + $0x3b8] sm:$0xff]  ;;  %v194_v41 = vld [vmem:[#allocation5 + $0x3b0] sm:$0xff] }
  0x49   :  { %532 = vmatmul.mubr.f32.vlgmr.msra.gmra.mxu0 %v52_v1  ;;  %601 = vmatprep.mubr.f32.mxu1 %v55_v2  ;;  %v147_v38 = vld [vmem:[#allocation5 + $0x238] sm:$0xff]  ;;  %v146_v42 = vld [vmem:[#allocation5 + $0x230] sm:$0xff]  ;;  %v161_v44 = vld [vmem:[#allocation5 + $0x2a8] sm:$0xff] }
  0x4a   :  { %1395 = vmatprep.subr.mxu0 %v171_v3  ;;  %1430 = vmatprep.subr.mxu1 %v203_v4  ;;  %v179_v39 = vld [vmem:[#allocation5 + $0x338] sm:$0xff]  ;;  %v178_v43 = vld [vmem:[#allocation5 + $0x330] sm:$0xff]  ;;  %v193_v45 = vld [vmem:[#allocation5 + $0x3a8] sm:$0xff] }
  0x4b   :  { %602 = vmatmul.mubr.f32.vlgmr.msra.gmra.mxu1 %v54_v5  ;;  %1396 = vmatpush3.msra.mxu0 %v155_v6  ;;  %v145_v46 = vld [vmem:[#allocation5 + $0x228] sm:$0xff]  ;;  %v160_v48 = vld [vmem:[#allocation5 + $0x2a0] sm:$0xff]  ;;  %v159_v52 = vld [vmem:[#allocation5 + $0x298] sm:$0xff] }
  0x4c   :  { %1431 = vmatpush3.msra.mxu1 %v187_v7  ;;  %1397 = vmatprep.subr.mxu0 %v170_v8  ;;  %v177_v47 = vld [vmem:[#allocation5 + $0x328] sm:$0xff]  ;;  %v192_v49 = vld [vmem:[#allocation5 + $0x3a0] sm:$0xff]  ;;  %v191_v53 = vld [vmem:[#allocation5 + $0x398] sm:$0xff] }
  0x4d   :  { %1432 = vmatprep.subr.mxu1 %v202_v9  ;;  %1398 = vmatpush3.msra.mxu0 %v154_v10  ;;  %v144_v50 = vld [vmem:[#allocation5 + $0x220] sm:$0xff]  ;;  %v143_v54 = vld [vmem:[#allocation5 + $0x218] sm:$0xff]  ;;  %v158_v56 = vld [vmem:[#allocation5 + $0x290] sm:$0xff] }
  0x4e   :  { %1433 = vmatpush3.msra.mxu1 %v186_v11  ;;  %1399 = vmatprep.subr.mxu0 %v169_v12  ;;  %v176_v51 = vld [vmem:[#allocation5 + $0x320] sm:$0xff]  ;;  %v175_v55 = vld [vmem:[#allocation5 + $0x318] sm:$0xff]  ;;  %v190_v57 = vld [vmem:[#allocation5 + $0x390] sm:$0xff] }
  0x4f   :  { %1434 = vmatprep.subr.mxu1 %v201_v13  ;;  %1400 = vmatpush3.msra.mxu0 %v153_v14  ;;  %v142_v58 = vld [vmem:[#allocation5 + $0x210] sm:$0xff]  ;;  %v157_v60 = vld [vmem:[#allocation5 + $0x288] sm:$0xff]  ;;  %v156_v0 = vld [vmem:[#allocation5 + $0x280] sm:$0xff] }
  0x50   :  { %1435 = vmatpush3.msra.mxu1 %v185_v15  ;;  %1401 = vmatprep.subr.mxu0 %v168_v16  ;;  %v174_v59 = vld [vmem:[#allocation5 + $0x310] sm:$0xff]  ;;  %v189_v61 = vld [vmem:[#allocation5 + $0x388] sm:$0xff]  ;;  %v188_v1 = vld [vmem:[#allocation5 + $0x380] sm:$0xff] }
  0x51   :  { %1436 = vmatprep.subr.mxu1 %v200_v17  ;;  %1402 = vmatpush3.msra.mxu0 %v152_v18  ;;  %v141_v62 = vld [vmem:[#allocation5 + $0x208] sm:$0xff]  ;;  %v140_v2 = vld [vmem:[#allocation5 + $0x200] sm:$0xff]  ;;  %v59_v6 = vld [vmem:[#allocation2 + $0x38] sm:$0xff] }
  0x52   :  { %1437 = vmatpush3.msra.mxu1 %v184_v19  ;;  %1403 = vmatprep.subr.mxu0 %v167_v20  ;;  %v173_v63 = vld [vmem:[#allocation5 + $0x308] sm:$0xff]  ;;  %v172_v4 = vld [vmem:[#allocation5 + $0x300] sm:$0xff]  ;;  %v235_v7 = vld [vmem:[#allocation5 + $0x4f8] sm:$0xff] }
  0x53   :  { %1438 = vmatprep.subr.mxu1 %v199_v21  ;;  %1404 = vmatpush3.msra.mxu0 %v151_v22  ;;  %v57_v3 = vld [vmem:[#allocation2 + $0x28] sm:$0xff]  ;;  %v56_v5 = vld [vmem:[#allocation2 + $0x20] sm:$0xff]  ;;  %v267_v8 = vld [vmem:[#allocation5 + $0x5f8] sm:$0xff] }
  0x54   :  { %1439 = vmatpush3.msra.mxu1 %v183_v23  ;;  %1405 = vmatprep.subr.mxu0 %v166_v24  ;;  %v58_v9 = vld [vmem:[#allocation2 + $0x30] sm:$0xff]  ;;  %v219_v10 = vld [vmem:[#allocation5 + $0x478] sm:$0xff]  ;;  %v233_v16 = vld [vmem:[#allocation5 + $0x4e8] sm:$0xff] }
  0x55   :  { %1440 = vmatprep.subr.mxu1 %v198_v25  ;;  %1406 = vmatpush3.msra.mxu0 %v150_v26  ;;  %v251_v11 = vld [vmem:[#allocation5 + $0x578] sm:$0xff]  ;;  %v234_v12 = vld [vmem:[#allocation5 + $0x4f0] sm:$0xff]  ;;  %v265_v17 = vld [vmem:[#allocation5 + $0x5e8] sm:$0xff] }
  0x56   :  { %1441 = vmatpush3.msra.mxu1 %v182_v27  ;;  %1407 = vmatprep.subr.mxu0 %v165_v28  ;;  %v266_v13 = vld [vmem:[#allocation5 + $0x5f0] sm:$0xff]  ;;  %v217_v18 = vld [vmem:[#allocation5 + $0x468] sm:$0xff]  ;;  %v232_v20 = vld [vmem:[#allocation5 + $0x4e0] sm:$0xff] }
  0x57   :  { %1442 = vmatprep.subr.mxu1 %v197_v29  ;;  %1408 = vmatpush3.msra.mxu0 %v149_v30  ;;  %v218_v14 = vld [vmem:[#allocation5 + $0x470] sm:$0xff]  ;;  %v249_v19 = vld [vmem:[#allocation5 + $0x568] sm:$0xff]  ;;  %v264_v21 = vld [vmem:[#allocation5 + $0x5e0] sm:$0xff] }
  0x58   :  { %1443 = vmatpush3.msra.mxu1 %v181_v31  ;;  %1409 = vmatprep.subr.mxu0 %v164_v32  ;;  %v250_v15 = vld [vmem:[#allocation5 + $0x570] sm:$0xff]  ;;  %v216_v22 = vld [vmem:[#allocation5 + $0x460] sm:$0xff]  ;;  %v231_v24 = vld [vmem:[#allocation5 + $0x4d8] sm:$0xff] }
  0x59   :  { %1444 = vmatprep.subr.mxu1 %v196_v33  ;;  %1410 = vmatpush3.msra.mxu0 %v148_v34  ;;  %v248_v23 = vld [vmem:[#allocation5 + $0x560] sm:$0xff]  ;;  %v263_v25 = vld [vmem:[#allocation5 + $0x5d8] sm:$0xff]  ;;  %v230_v28 = vld [vmem:[#allocation5 + $0x4d0] sm:$0xff] }
  0x5a   :  { %1445 = vmatpush3.msra.mxu1 %v180_v35  ;;  %1411 = vmatprep.subr.mxu0 %v163_v36  ;;  %v215_v26 = vld [vmem:[#allocation5 + $0x458] sm:$0xff]  ;;  %v262_v29 = vld [vmem:[#allocation5 + $0x5d0] sm:$0xff]  ;;  %v229_v32 = vld [vmem:[#allocation5 + $0x4c8] sm:$0xff] }
  0x5b   :  { %1446 = vmatprep.subr.mxu1 %v195_v37  ;;  %1412 = vmatpush3.msra.mxu0 %v147_v38  ;;  %v247_v27 = vld [vmem:[#allocation5 + $0x558] sm:$0xff]  ;;  %v214_v30 = vld [vmem:[#allocation5 + $0x450] sm:$0xff]  ;;  %v261_v33 = vld [vmem:[#allocation5 + $0x5c8] sm:$0xff] }
  0x5c   :  { %1447 = vmatpush3.msra.mxu1 %v179_v39  ;;  %1413 = vmatprep.subr.mxu0 %v162_v40  ;;  %v246_v31 = vld [vmem:[#allocation5 + $0x550] sm:$0xff]  ;;  %v213_v34 = vld [vmem:[#allocation5 + $0x448] sm:$0xff]  ;;  %v228_v36 = vld [vmem:[#allocation5 + $0x4c0] sm:$0xff] }
  0x5d   :  { %1448 = vmatprep.subr.mxu1 %v194_v41  ;;  %1414 = vmatpush3.msra.mxu0 %v146_v42  ;;  %v245_v35 = vld [vmem:[#allocation5 + $0x548] sm:$0xff]  ;;  %v260_v37 = vld [vmem:[#allocation5 + $0x5c0] sm:$0xff]  ;;  %v227_v40 = vld [vmem:[#allocation5 + $0x4b8] sm:$0xff] }
  0x5e   :  { %1449 = vmatpush3.msra.mxu1 %v178_v43  ;;  %1415 = vmatprep.subr.mxu0 %v161_v44  ;;  %v212_v38 = vld [vmem:[#allocation5 + $0x440] sm:$0xff]  ;;  %v259_v41 = vld [vmem:[#allocation5 + $0x5b8] sm:$0xff]  ;;  %v226_v44 = vld [vmem:[#allocation5 + $0x4b0] sm:$0xff] }
  0x5f   :  { %1450 = vmatprep.subr.mxu1 %v193_v45  ;;  %1416 = vmatpush3.msra.mxu0 %v145_v46  ;;  %v244_v39 = vld [vmem:[#allocation5 + $0x540] sm:$0xff]  ;;  %v211_v42 = vld [vmem:[#allocation5 + $0x438] sm:$0xff]  ;;  %v258_v45 = vld [vmem:[#allocation5 + $0x5b0] sm:$0xff] }
  0x60   :  { %1451 = vmatpush3.msra.mxu1 %v177_v47  ;;  %1417 = vmatprep.subr.mxu0 %v160_v48  ;;  %v243_v43 = vld [vmem:[#allocation5 + $0x538] sm:$0xff]  ;;  %v210_v46 = vld [vmem:[#allocation5 + $0x430] sm:$0xff]  ;;  %v225_v48 = vld [vmem:[#allocation5 + $0x4a8] sm:$0xff] }
  0x61   :  { %1452 = vmatprep.subr.mxu1 %v192_v49  ;;  %1418 = vmatpush3.msra.mxu0 %v144_v50  ;;  %v242_v47 = vld [vmem:[#allocation5 + $0x530] sm:$0xff]  ;;  %v257_v49 = vld [vmem:[#allocation5 + $0x5a8] sm:$0xff] }
  0x62   :  { %1453 = vmatpush3.msra.mxu1 %v176_v51  ;;  %1419 = vmatprep.subr.mxu0 %v159_v52  ;;  %v209_v50 = vld [vmem:[#allocation5 + $0x428] sm:$0xff]  ;;  %v224_v52 = vld [vmem:[#allocation5 + $0x4a0] sm:$0xff] }
  0x63   :  { %1454 = vmatprep.subr.mxu1 %v191_v53  ;;  %1420 = vmatpush3.msra.mxu0 %v143_v54  ;;  %v241_v51 = vld [vmem:[#allocation5 + $0x528] sm:$0xff]  ;;  %v256_v53 = vld [vmem:[#allocation5 + $0x5a0] sm:$0xff] }
  0x64   :  { %1455 = vmatpush3.msra.mxu1 %v175_v55  ;;  %1421 = vmatprep.subr.mxu0 %v158_v56  ;;  %v208_v54 = vld [vmem:[#allocation5 + $0x420] sm:$0xff]  ;;  %v223_v56 = vld [vmem:[#allocation5 + $0x498] sm:$0xff] }
  0x65   :  { %1456 = vmatprep.subr.mxu1 %v190_v57  ;;  %1422 = vmatpush3.msra.mxu0 %v142_v58  ;;  %v240_v55 = vld [vmem:[#allocation5 + $0x520] sm:$0xff]  ;;  %v255_v57 = vld [vmem:[#allocation5 + $0x598] sm:$0xff] }
  0x66   :  { %1457 = vmatpush3.msra.mxu1 %v174_v59  ;;  %1423 = vmatprep.subr.mxu0 %v157_v60  ;;  %v207_v58 = vld [vmem:[#allocation5 + $0x418] sm:$0xff]  ;;  %v222_v60 = vld [vmem:[#allocation5 + $0x490] sm:$0xff] }
  0x67   :  { %1458 = vmatprep.subr.mxu1 %v189_v61  ;;  %1424 = vmatpush3.msra.mxu0 %v141_v62  ;;  %v239_v59 = vld [vmem:[#allocation5 + $0x518] sm:$0xff]  ;;  %v254_v61 = vld [vmem:[#allocation5 + $0x590] sm:$0xff] }
  0x68   :  { %1459 = vmatpush3.msra.mxu1 %v173_v63  ;;  %1425 = vmatprep.subr.mxu0 %v156_v0  ;;  %v206_v62 = vld [vmem:[#allocation5 + $0x410] sm:$0xff]  ;;  %v221_v0 = vld [vmem:[#allocation5 + $0x488] sm:$0xff] }
  0x69   :  { %1460 = vmatprep.subr.mxu1 %v188_v1  ;;  %1426 = vmatpush3.msra.mxu0 %v140_v2  ;;  %v238_v63 = vld [vmem:[#allocation5 + $0x510] sm:$0xff]  ;;  %v253_v1 = vld [vmem:[#allocation5 + $0x588] sm:$0xff] }
  0x6a   :  { %671 = vmatprep.mubr.f32.mxu0 %v57_v3  ;;  %1461 = vmatpush3.msra.mxu1 %v172_v4  ;;  %v205_v2 = vld [vmem:[#allocation5 + $0x408] sm:$0xff]  ;;  %v220_v4 = vld [vmem:[#allocation5 + $0x480] sm:$0xff] }
  0x6b   :  { %672 = vmatmul.mubr.f32.vlgmr.msra.gmra.mxu0 %v56_v5  ;;  %741 = vmatprep.mubr.f32.mxu1 %v59_v6  ;;  %v237_v3 = vld [vmem:[#allocation5 + $0x508] sm:$0xff]  ;;  %v252_v5 = vld [vmem:[#allocation5 + $0x580] sm:$0xff] }
  0x6c   :  { %1465 = vmatprep.subr.mxu0 %v235_v7  ;;  %1500 = vmatprep.subr.mxu1 %v267_v8  ;;  %v204_v6 = vld [vmem:[#allocation5 + $0x400] sm:$0xff]  ;;  %v61_v7 = vld [vmem:[#allocation2 + $0x48] sm:$0xff] }
  0x6d   :  { %742 = vmatmul.mubr.f32.vlgmr.msra.gmra.mxu1 %v58_v9  ;;  %1466 = vmatpush3.msra.mxu0 %v219_v10  ;;  %v236_v8 = vld [vmem:[#allocation5 + $0x500] sm:$0xff]  ;;  %v63_v10 = vld [vmem:[#allocation2 + $0x58] sm:$0xff] }
  0x6e   :  { %1501 = vmatpush3.msra.mxu1 %v251_v11  ;;  %1467 = vmatprep.subr.mxu0 %v234_v12  ;;  %v60_v9 = vld [vmem:[#allocation2 + $0x40] sm:$0xff]  ;;  %v299_v11 = vld [vmem:[#allocation5 + $0x6f8] sm:$0xff] }
  0x6f   :  { %1502 = vmatprep.subr.mxu1 %v266_v13  ;;  %1468 = vmatpush3.msra.mxu0 %v218_v14  ;;  %v331_v12 = vld [vmem:[#allocation5 + $0x7f8] sm:$0xff]  ;;  %v62_v13 = vld [vmem:[#allocation2 + $0x50] sm:$0xff] }
  0x70   :  { %1503 = vmatpush3.msra.mxu1 %v250_v15  ;;  %1469 = vmatprep.subr.mxu0 %v233_v16  ;;  %v283_v14 = vld [vmem:[#allocation5 + $0x678] sm:$0xff]  ;;  %v298_v16 = vld [vmem:[#allocation5 + $0x6f0] sm:$0xff] }
  0x71   :  { %1504 = vmatprep.subr.mxu1 %v265_v17  ;;  %1470 = vmatpush3.msra.mxu0 %v217_v18  ;;  %v315_v15 = vld [vmem:[#allocation5 + $0x778] sm:$0xff]  ;;  %v330_v17 = vld [vmem:[#allocation5 + $0x7f0] sm:$0xff] }
  0x72   :  { %1505 = vmatpush3.msra.mxu1 %v249_v19  ;;  %1471 = vmatprep.subr.mxu0 %v232_v20  ;;  %v282_v18 = vld [vmem:[#allocation5 + $0x670] sm:$0xff]  ;;  %v297_v20 = vld [vmem:[#allocation5 + $0x6e8] sm:$0xff] }
  0x73   :  { %1506 = vmatprep.subr.mxu1 %v264_v21  ;;  %1472 = vmatpush3.msra.mxu0 %v216_v22  ;;  %v314_v19 = vld [vmem:[#allocation5 + $0x770] sm:$0xff]  ;;  %v329_v21 = vld [vmem:[#allocation5 + $0x7e8] sm:$0xff] }
  0x74   :  { %1507 = vmatpush3.msra.mxu1 %v248_v23  ;;  %1473 = vmatprep.subr.mxu0 %v231_v24  ;;  %v281_v22 = vld [vmem:[#allocation5 + $0x668] sm:$0xff]  ;;  %v296_v24 = vld [vmem:[#allocation5 + $0x6e0] sm:$0xff] }
  0x75   :  { %1508 = vmatprep.subr.mxu1 %v263_v25  ;;  %1474 = vmatpush3.msra.mxu0 %v215_v26  ;;  %v313_v23 = vld [vmem:[#allocation5 + $0x768] sm:$0xff]  ;;  %v328_v25 = vld [vmem:[#allocation5 + $0x7e0] sm:$0xff] }
  0x76   :  { %1509 = vmatpush3.msra.mxu1 %v247_v27  ;;  %1475 = vmatprep.subr.mxu0 %v230_v28  ;;  %v280_v26 = vld [vmem:[#allocation5 + $0x660] sm:$0xff]  ;;  %v295_v28 = vld [vmem:[#allocation5 + $0x6d8] sm:$0xff] }
  0x77   :  { %1510 = vmatprep.subr.mxu1 %v262_v29  ;;  %1476 = vmatpush3.msra.mxu0 %v214_v30  ;;  %v312_v27 = vld [vmem:[#allocation5 + $0x760] sm:$0xff]  ;;  %v327_v29 = vld [vmem:[#allocation5 + $0x7d8] sm:$0xff] }
  0x78   :  { %1511 = vmatpush3.msra.mxu1 %v246_v31  ;;  %1477 = vmatprep.subr.mxu0 %v229_v32  ;;  %v279_v30 = vld [vmem:[#allocation5 + $0x658] sm:$0xff]  ;;  %v294_v32 = vld [vmem:[#allocation5 + $0x6d0] sm:$0xff] }
  0x79   :  { %1512 = vmatprep.subr.mxu1 %v261_v33  ;;  %1478 = vmatpush3.msra.mxu0 %v213_v34  ;;  %v311_v31 = vld [vmem:[#allocation5 + $0x758] sm:$0xff]  ;;  %v326_v33 = vld [vmem:[#allocation5 + $0x7d0] sm:$0xff] }
  0x7a   :  { %1513 = vmatpush3.msra.mxu1 %v245_v35  ;;  %1479 = vmatprep.subr.mxu0 %v228_v36  ;;  %v278_v34 = vld [vmem:[#allocation5 + $0x650] sm:$0xff]  ;;  %v293_v36 = vld [vmem:[#allocation5 + $0x6c8] sm:$0xff] }
  0x7b   :  { %1514 = vmatprep.subr.mxu1 %v260_v37  ;;  %1480 = vmatpush3.msra.mxu0 %v212_v38  ;;  %v310_v35 = vld [vmem:[#allocation5 + $0x750] sm:$0xff]  ;;  %v325_v37 = vld [vmem:[#allocation5 + $0x7c8] sm:$0xff] }
  0x7c   :  { %1515 = vmatpush3.msra.mxu1 %v244_v39  ;;  %1481 = vmatprep.subr.mxu0 %v227_v40  ;;  %v277_v38 = vld [vmem:[#allocation5 + $0x648] sm:$0xff]  ;;  %v292_v40 = vld [vmem:[#allocation5 + $0x6c0] sm:$0xff] }
  0x7d   :  { %1516 = vmatprep.subr.mxu1 %v259_v41  ;;  %1482 = vmatpush3.msra.mxu0 %v211_v42  ;;  %v309_v39 = vld [vmem:[#allocation5 + $0x748] sm:$0xff]  ;;  %v324_v41 = vld [vmem:[#allocation5 + $0x7c0] sm:$0xff] }
  0x7e   :  { %1517 = vmatpush3.msra.mxu1 %v243_v43  ;;  %1483 = vmatprep.subr.mxu0 %v226_v44  ;;  %v276_v42 = vld [vmem:[#allocation5 + $0x640] sm:$0xff]  ;;  %v291_v44 = vld [vmem:[#allocation5 + $0x6b8] sm:$0xff] }
  0x7f   :  { %1518 = vmatprep.subr.mxu1 %v258_v45  ;;  %1484 = vmatpush3.msra.mxu0 %v210_v46  ;;  %v308_v43 = vld [vmem:[#allocation5 + $0x740] sm:$0xff]  ;;  %v323_v45 = vld [vmem:[#allocation5 + $0x7b8] sm:$0xff] }
  0x80   :  { %1519 = vmatpush3.msra.mxu1 %v242_v47  ;;  %1485 = vmatprep.subr.mxu0 %v225_v48  ;;  %v275_v46 = vld [vmem:[#allocation5 + $0x638] sm:$0xff]  ;;  %v290_v48 = vld [vmem:[#allocation5 + $0x6b0] sm:$0xff] }
  0x81   :  { %1520 = vmatprep.subr.mxu1 %v257_v49  ;;  %1486 = vmatpush3.msra.mxu0 %v209_v50  ;;  %v307_v47 = vld [vmem:[#allocation5 + $0x738] sm:$0xff]  ;;  %v322_v49 = vld [vmem:[#allocation5 + $0x7b0] sm:$0xff] }
  0x82   :  { %1521 = vmatpush3.msra.mxu1 %v241_v51  ;;  %1487 = vmatprep.subr.mxu0 %v224_v52  ;;  %v274_v50 = vld [vmem:[#allocation5 + $0x630] sm:$0xff]  ;;  %v289_v52 = vld [vmem:[#allocation5 + $0x6a8] sm:$0xff] }
  0x83   :  { %1522 = vmatprep.subr.mxu1 %v256_v53  ;;  %1488 = vmatpush3.msra.mxu0 %v208_v54  ;;  %v306_v51 = vld [vmem:[#allocation5 + $0x730] sm:$0xff]  ;;  %v321_v53 = vld [vmem:[#allocation5 + $0x7a8] sm:$0xff] }
  0x84   :  { %1523 = vmatpush3.msra.mxu1 %v240_v55  ;;  %1489 = vmatprep.subr.mxu0 %v223_v56  ;;  %v273_v54 = vld [vmem:[#allocation5 + $0x628] sm:$0xff]  ;;  %v288_v56 = vld [vmem:[#allocation5 + $0x6a0] sm:$0xff] }
  0x85   :  { %1524 = vmatprep.subr.mxu1 %v255_v57  ;;  %1490 = vmatpush3.msra.mxu0 %v207_v58  ;;  %v305_v55 = vld [vmem:[#allocation5 + $0x728] sm:$0xff]  ;;  %v320_v57 = vld [vmem:[#allocation5 + $0x7a0] sm:$0xff] }
  0x86   :  { %1525 = vmatpush3.msra.mxu1 %v239_v59  ;;  %1491 = vmatprep.subr.mxu0 %v222_v60  ;;  %v272_v58 = vld [vmem:[#allocation5 + $0x620] sm:$0xff]  ;;  %v287_v60 = vld [vmem:[#allocation5 + $0x698] sm:$0xff] }
  0x87   :  { %1526 = vmatprep.subr.mxu1 %v254_v61  ;;  %1492 = vmatpush3.msra.mxu0 %v206_v62  ;;  %v304_v59 = vld [vmem:[#allocation5 + $0x720] sm:$0xff]  ;;  %v319_v61 = vld [vmem:[#allocation5 + $0x798] sm:$0xff] }
  0x88   :  { %1527 = vmatpush3.msra.mxu1 %v238_v63  ;;  %1493 = vmatprep.subr.mxu0 %v221_v0  ;;  %v271_v62 = vld [vmem:[#allocation5 + $0x618] sm:$0xff]  ;;  %v286_v0 = vld [vmem:[#allocation5 + $0x690] sm:$0xff] }
  0x89   :  { %1528 = vmatprep.subr.mxu1 %v253_v1  ;;  %1494 = vmatpush3.msra.mxu0 %v205_v2  ;;  %v303_v63 = vld [vmem:[#allocation5 + $0x718] sm:$0xff]  ;;  %v318_v1 = vld [vmem:[#allocation5 + $0x790] sm:$0xff] }
  0x8a   :  { %1529 = vmatpush3.msra.mxu1 %v237_v3  ;;  %1495 = vmatprep.subr.mxu0 %v220_v4  ;;  %v270_v2 = vld [vmem:[#allocation5 + $0x610] sm:$0xff]  ;;  %v285_v4 = vld [vmem:[#allocation5 + $0x688] sm:$0xff] }
  0x8b   :  { %1530 = vmatprep.subr.mxu1 %v252_v5  ;;  %1496 = vmatpush3.msra.mxu0 %v204_v6  ;;  %v302_v3 = vld [vmem:[#allocation5 + $0x710] sm:$0xff]  ;;  %v317_v5 = vld [vmem:[#allocation5 + $0x788] sm:$0xff] }
  0x8c   :  { %811 = vmatprep.mubr.f32.mxu0 %v61_v7  ;;  %1531 = vmatpush3.msra.mxu1 %v236_v8  ;;  %v269_v6 = vld [vmem:[#allocation5 + $0x608] sm:$0xff]  ;;  %v284_v8 = vld [vmem:[#allocation5 + $0x680] sm:$0xff] }
  0x8d   :  { %812 = vmatmul.mubr.f32.vlgmr.msra.gmra.mxu0 %v60_v9  ;;  %881 = vmatprep.mubr.f32.mxu1 %v63_v10  ;;  %v301_v7 = vld [vmem:[#allocation5 + $0x708] sm:$0xff]  ;;  %v316_v9 = vld [vmem:[#allocation5 + $0x780] sm:$0xff] }
  0x8e   :  { %1535 = vmatprep.subr.mxu0 %v299_v11  ;;  %1570 = vmatprep.subr.mxu1 %v331_v12  ;;  %v268_v10 = vld [vmem:[#allocation5 + $0x600] sm:$0xff]  ;;  %v65_v11 = vld [vmem:[#allocation2 + $0x68] sm:$0xff] }
  0x8f   :  { %882 = vmatmul.mubr.f32.vlgmr.msra.gmra.mxu1 %v62_v13  ;;  %1536 = vmatpush3.msra.mxu0 %v283_v14  ;;  %v300_v12 = vld [vmem:[#allocation5 + $0x700] sm:$0xff]  ;;  %v67_v14 = vld [vmem:[#allocation2 + $0x78] sm:$0xff] }
  0x90   :  { %1571 = vmatpush3.msra.mxu1 %v315_v15  ;;  %1537 = vmatprep.subr.mxu0 %v298_v16  ;;  %v64_v13 = vld [vmem:[#allocation2 + $0x60] sm:$0xff]  ;;  %v363_v15 = vld [vmem:[#allocation5 + $0x8f8] sm:$0xff] }
  0x91   :  { %1572 = vmatprep.subr.mxu1 %v330_v17  ;;  %1538 = vmatpush3.msra.mxu0 %v282_v18  ;;  %v395_v16 = vld [vmem:[#allocation5 + $0x9f8] sm:$0xff]  ;;  %v66_v17 = vld [vmem:[#allocation2 + $0x70] sm:$0xff] }
  0x92   :  { %1573 = vmatpush3.msra.mxu1 %v314_v19  ;;  %1539 = vmatprep.subr.mxu0 %v297_v20  ;;  %v347_v18 = vld [vmem:[#allocation5 + $0x878] sm:$0xff]  ;;  %v362_v20 = vld [vmem:[#allocation5 + $0x8f0] sm:$0xff] }
  0x93   :  { %1574 = vmatprep.subr.mxu1 %v329_v21  ;;  %1540 = vmatpush3.msra.mxu0 %v281_v22  ;;  %v379_v19 = vld [vmem:[#allocation5 + $0x978] sm:$0xff]  ;;  %v394_v21 = vld [vmem:[#allocation5 + $0x9f0] sm:$0xff] }
  0x94   :  { %1575 = vmatpush3.msra.mxu1 %v313_v23  ;;  %1541 = vmatprep.subr.mxu0 %v296_v24  ;;  %v346_v22 = vld [vmem:[#allocation5 + $0x870] sm:$0xff]  ;;  %v361_v24 = vld [vmem:[#allocation5 + $0x8e8] sm:$0xff] }
  0x95   :  { %1576 = vmatprep.subr.mxu1 %v328_v25  ;;  %1542 = vmatpush3.msra.mxu0 %v280_v26  ;;  %v378_v23 = vld [vmem:[#allocation5 + $0x970] sm:$0xff]  ;;  %v393_v25 = vld [vmem:[#allocation5 + $0x9e8] sm:$0xff] }
  0x96   :  { %1577 = vmatpush3.msra.mxu1 %v312_v27  ;;  %1543 = vmatprep.subr.mxu0 %v295_v28  ;;  %v345_v26 = vld [vmem:[#allocation5 + $0x868] sm:$0xff]  ;;  %v360_v28 = vld [vmem:[#allocation5 + $0x8e0] sm:$0xff] }
  0x97   :  { %1578 = vmatprep.subr.mxu1 %v327_v29  ;;  %1544 = vmatpush3.msra.mxu0 %v279_v30  ;;  %v377_v27 = vld [vmem:[#allocation5 + $0x968] sm:$0xff]  ;;  %v392_v29 = vld [vmem:[#allocation5 + $0x9e0] sm:$0xff] }
  0x98   :  { %1579 = vmatpush3.msra.mxu1 %v311_v31  ;;  %1545 = vmatprep.subr.mxu0 %v294_v32  ;;  %v344_v30 = vld [vmem:[#allocation5 + $0x860] sm:$0xff]  ;;  %v359_v32 = vld [vmem:[#allocation5 + $0x8d8] sm:$0xff] }
  0x99   :  { %1580 = vmatprep.subr.mxu1 %v326_v33  ;;  %1546 = vmatpush3.msra.mxu0 %v278_v34  ;;  %v376_v31 = vld [vmem:[#allocation5 + $0x960] sm:$0xff]  ;;  %v391_v33 = vld [vmem:[#allocation5 + $0x9d8] sm:$0xff] }
  0x9a   :  { %1581 = vmatpush3.msra.mxu1 %v310_v35  ;;  %1547 = vmatprep.subr.mxu0 %v293_v36  ;;  %v343_v34 = vld [vmem:[#allocation5 + $0x858] sm:$0xff]  ;;  %v358_v36 = vld [vmem:[#allocation5 + $0x8d0] sm:$0xff] }
  0x9b   :  { %1582 = vmatprep.subr.mxu1 %v325_v37  ;;  %1548 = vmatpush3.msra.mxu0 %v277_v38  ;;  %v375_v35 = vld [vmem:[#allocation5 + $0x958] sm:$0xff]  ;;  %v390_v37 = vld [vmem:[#allocation5 + $0x9d0] sm:$0xff] }
  0x9c   :  { %1583 = vmatpush3.msra.mxu1 %v309_v39  ;;  %1549 = vmatprep.subr.mxu0 %v292_v40  ;;  %v342_v38 = vld [vmem:[#allocation5 + $0x850] sm:$0xff]  ;;  %v357_v40 = vld [vmem:[#allocation5 + $0x8c8] sm:$0xff] }
  0x9d   :  { %1584 = vmatprep.subr.mxu1 %v324_v41  ;;  %1550 = vmatpush3.msra.mxu0 %v276_v42  ;;  %v374_v39 = vld [vmem:[#allocation5 + $0x950] sm:$0xff]  ;;  %v389_v41 = vld [vmem:[#allocation5 + $0x9c8] sm:$0xff] }
  0x9e   :  { %1585 = vmatpush3.msra.mxu1 %v308_v43  ;;  %1551 = vmatprep.subr.mxu0 %v291_v44  ;;  %v341_v42 = vld [vmem:[#allocation5 + $0x848] sm:$0xff]  ;;  %v356_v44 = vld [vmem:[#allocation5 + $0x8c0] sm:$0xff] }
  0x9f   :  { %1586 = vmatprep.subr.mxu1 %v323_v45  ;;  %1552 = vmatpush3.msra.mxu0 %v275_v46  ;;  %v373_v43 = vld [vmem:[#allocation5 + $0x948] sm:$0xff]  ;;  %v388_v45 = vld [vmem:[#allocation5 + $0x9c0] sm:$0xff] }
  0xa0   :  { %1587 = vmatpush3.msra.mxu1 %v307_v47  ;;  %1553 = vmatprep.subr.mxu0 %v290_v48  ;;  %v340_v46 = vld [vmem:[#allocation5 + $0x840] sm:$0xff]  ;;  %v355_v48 = vld [vmem:[#allocation5 + $0x8b8] sm:$0xff] }
  0xa1   :  { %1588 = vmatprep.subr.mxu1 %v322_v49  ;;  %1554 = vmatpush3.msra.mxu0 %v274_v50  ;;  %v372_v47 = vld [vmem:[#allocation5 + $0x940] sm:$0xff]  ;;  %v387_v49 = vld [vmem:[#allocation5 + $0x9b8] sm:$0xff] }
  0xa2   :  { %1589 = vmatpush3.msra.mxu1 %v306_v51  ;;  %1555 = vmatprep.subr.mxu0 %v289_v52  ;;  %v339_v50 = vld [vmem:[#allocation5 + $0x838] sm:$0xff]  ;;  %v354_v52 = vld [vmem:[#allocation5 + $0x8b0] sm:$0xff] }
  0xa3   :  { %1590 = vmatprep.subr.mxu1 %v321_v53  ;;  %1556 = vmatpush3.msra.mxu0 %v273_v54  ;;  %v371_v51 = vld [vmem:[#allocation5 + $0x938] sm:$0xff]  ;;  %v386_v53 = vld [vmem:[#allocation5 + $0x9b0] sm:$0xff] }
  0xa4   :  { %1591 = vmatpush3.msra.mxu1 %v305_v55  ;;  %1557 = vmatprep.subr.mxu0 %v288_v56  ;;  %v338_v54 = vld [vmem:[#allocation5 + $0x830] sm:$0xff]  ;;  %v353_v56 = vld [vmem:[#allocation5 + $0x8a8] sm:$0xff] }
  0xa5   :  { %1592 = vmatprep.subr.mxu1 %v320_v57  ;;  %1558 = vmatpush3.msra.mxu0 %v272_v58  ;;  %v370_v55 = vld [vmem:[#allocation5 + $0x930] sm:$0xff]  ;;  %v385_v57 = vld [vmem:[#allocation5 + $0x9a8] sm:$0xff] }
  0xa6   :  { %1593 = vmatpush3.msra.mxu1 %v304_v59  ;;  %1559 = vmatprep.subr.mxu0 %v287_v60  ;;  %v337_v58 = vld [vmem:[#allocation5 + $0x828] sm:$0xff]  ;;  %v352_v60 = vld [vmem:[#allocation5 + $0x8a0] sm:$0xff] }
  0xa7   :  { %1594 = vmatprep.subr.mxu1 %v319_v61  ;;  %1560 = vmatpush3.msra.mxu0 %v271_v62  ;;  %v369_v59 = vld [vmem:[#allocation5 + $0x928] sm:$0xff]  ;;  %v384_v61 = vld [vmem:[#allocation5 + $0x9a0] sm:$0xff] }
  0xa8   :  { %1595 = vmatpush3.msra.mxu1 %v303_v63  ;;  %1561 = vmatprep.subr.mxu0 %v286_v0  ;;  %v336_v62 = vld [vmem:[#allocation5 + $0x820] sm:$0xff]  ;;  %v351_v0 = vld [vmem:[#allocation5 + $0x898] sm:$0xff] }
  0xa9   :  { %1596 = vmatprep.subr.mxu1 %v318_v1  ;;  %1562 = vmatpush3.msra.mxu0 %v270_v2  ;;  %v368_v63 = vld [vmem:[#allocation5 + $0x920] sm:$0xff]  ;;  %v383_v1 = vld [vmem:[#allocation5 + $0x998] sm:$0xff] }
  0xaa   :  { %1597 = vmatpush3.msra.mxu1 %v302_v3  ;;  %1563 = vmatprep.subr.mxu0 %v285_v4  ;;  %v335_v2 = vld [vmem:[#allocation5 + $0x818] sm:$0xff]  ;;  %v350_v4 = vld [vmem:[#allocation5 + $0x890] sm:$0xff] }
  0xab   :  { %1598 = vmatprep.subr.mxu1 %v317_v5  ;;  %1564 = vmatpush3.msra.mxu0 %v269_v6  ;;  %v367_v3 = vld [vmem:[#allocation5 + $0x918] sm:$0xff]  ;;  %v382_v5 = vld [vmem:[#allocation5 + $0x990] sm:$0xff] }
  0xac   :  { %1599 = vmatpush3.msra.mxu1 %v301_v7  ;;  %1565 = vmatprep.subr.mxu0 %v284_v8  ;;  %v334_v6 = vld [vmem:[#allocation5 + $0x810] sm:$0xff]  ;;  %v349_v8 = vld [vmem:[#allocation5 + $0x888] sm:$0xff] }
  0xad   :  { %1600 = vmatprep.subr.mxu1 %v316_v9  ;;  %1566 = vmatpush3.msra.mxu0 %v268_v10  ;;  %v366_v7 = vld [vmem:[#allocation5 + $0x910] sm:$0xff]  ;;  %v381_v9 = vld [vmem:[#allocation5 + $0x988] sm:$0xff] }
  0xae   :  { %951 = vmatprep.mubr.f32.mxu0 %v65_v11  ;;  %1601 = vmatpush3.msra.mxu1 %v300_v12  ;;  %v333_v10 = vld [vmem:[#allocation5 + $0x808] sm:$0xff]  ;;  %v348_v12 = vld [vmem:[#allocation5 + $0x880] sm:$0xff] }
  0xaf   :  { %952 = vmatmul.mubr.f32.vlgmr.msra.gmra.mxu0 %v64_v13  ;;  %1021 = vmatprep.mubr.f32.mxu1 %v67_v14  ;;  %v365_v11 = vld [vmem:[#allocation5 + $0x908] sm:$0xff]  ;;  %v380_v13 = vld [vmem:[#allocation5 + $0x980] sm:$0xff] }
  0xb0   :  { %1605 = vmatprep.subr.mxu0 %v363_v15  ;;  %1640 = vmatprep.subr.mxu1 %v395_v16  ;;  %v332_v14 = vld [vmem:[#allocation5 + $0x800] sm:$0xff]  ;;  %v69_v15 = vld [vmem:[#allocation2 + $0x88] sm:$0xff] }
  0xb1   :  { %1022 = vmatmul.mubr.f32.vlgmr.msra.gmra.mxu1 %v66_v17  ;;  %1606 = vmatpush3.msra.mxu0 %v347_v18  ;;  %v364_v16 = vld [vmem:[#allocation5 + $0x900] sm:$0xff]  ;;  %v71_v18 = vld [vmem:[#allocation2 + $0x98] sm:$0xff] }
  0xb2   :  { %1641 = vmatpush3.msra.mxu1 %v379_v19  ;;  %1607 = vmatprep.subr.mxu0 %v362_v20  ;;  %v68_v17 = vld [vmem:[#allocation2 + $0x80] sm:$0xff]  ;;  %v427_v19 = vld [vmem:[#allocation5 + $0xaf8] sm:$0xff] }
  0xb3   :  { %1642 = vmatprep.subr.mxu1 %v394_v21  ;;  %1608 = vmatpush3.msra.mxu0 %v346_v22  ;;  %v459_v20 = vld [vmem:[#allocation5 + $0xbf8] sm:$0xff]  ;;  %v70_v21 = vld [vmem:[#allocation2 + $0x90] sm:$0xff] }
  0xb4   :  { %1643 = vmatpush3.msra.mxu1 %v378_v23  ;;  %1609 = vmatprep.subr.mxu0 %v361_v24  ;;  %v411_v22 = vld [vmem:[#allocation5 + $0xa78] sm:$0xff]  ;;  %v426_v24 = vld [vmem:[#allocation5 + $0xaf0] sm:$0xff] }
  0xb5   :  { %1644 = vmatprep.subr.mxu1 %v393_v25  ;;  %1610 = vmatpush3.msra.mxu0 %v345_v26  ;;  %v443_v23 = vld [vmem:[#allocation5 + $0xb78] sm:$0xff]  ;;  %v458_v25 = vld [vmem:[#allocation5 + $0xbf0] sm:$0xff] }
  0xb6   :  { %1645 = vmatpush3.msra.mxu1 %v377_v27  ;;  %1611 = vmatprep.subr.mxu0 %v360_v28  ;;  %v410_v26 = vld [vmem:[#allocation5 + $0xa70] sm:$0xff]  ;;  %v425_v28 = vld [vmem:[#allocation5 + $0xae8] sm:$0xff] }
  0xb7   :  { %1646 = vmatprep.subr.mxu1 %v392_v29  ;;  %1612 = vmatpush3.msra.mxu0 %v344_v30  ;;  %v442_v27 = vld [vmem:[#allocation5 + $0xb70] sm:$0xff]  ;;  %v457_v29 = vld [vmem:[#allocation5 + $0xbe8] sm:$0xff] }
  0xb8   :  { %1647 = vmatpush3.msra.mxu1 %v376_v31  ;;  %1613 = vmatprep.subr.mxu0 %v359_v32  ;;  %v409_v30 = vld [vmem:[#allocation5 + $0xa68] sm:$0xff]  ;;  %v424_v32 = vld [vmem:[#allocation5 + $0xae0] sm:$0xff] }
  0xb9   :  { %1648 = vmatprep.subr.mxu1 %v391_v33  ;;  %1614 = vmatpush3.msra.mxu0 %v343_v34  ;;  %v441_v31 = vld [vmem:[#allocation5 + $0xb68] sm:$0xff]  ;;  %v456_v33 = vld [vmem:[#allocation5 + $0xbe0] sm:$0xff] }
  0xba   :  { %1649 = vmatpush3.msra.mxu1 %v375_v35  ;;  %1615 = vmatprep.subr.mxu0 %v358_v36  ;;  %v408_v34 = vld [vmem:[#allocation5 + $0xa60] sm:$0xff]  ;;  %v423_v36 = vld [vmem:[#allocation5 + $0xad8] sm:$0xff] }
  0xbb   :  { %1650 = vmatprep.subr.mxu1 %v390_v37  ;;  %1616 = vmatpush3.msra.mxu0 %v342_v38  ;;  %v440_v35 = vld [vmem:[#allocation5 + $0xb60] sm:$0xff]  ;;  %v455_v37 = vld [vmem:[#allocation5 + $0xbd8] sm:$0xff] }
  0xbc   :  { %1651 = vmatpush3.msra.mxu1 %v374_v39  ;;  %1617 = vmatprep.subr.mxu0 %v357_v40  ;;  %v407_v38 = vld [vmem:[#allocation5 + $0xa58] sm:$0xff]  ;;  %v422_v40 = vld [vmem:[#allocation5 + $0xad0] sm:$0xff] }
  0xbd   :  { %1652 = vmatprep.subr.mxu1 %v389_v41  ;;  %1618 = vmatpush3.msra.mxu0 %v341_v42  ;;  %v439_v39 = vld [vmem:[#allocation5 + $0xb58] sm:$0xff]  ;;  %v454_v41 = vld [vmem:[#allocation5 + $0xbd0] sm:$0xff] }
  0xbe   :  { %1653 = vmatpush3.msra.mxu1 %v373_v43  ;;  %1619 = vmatprep.subr.mxu0 %v356_v44  ;;  %v406_v42 = vld [vmem:[#allocation5 + $0xa50] sm:$0xff]  ;;  %v421_v44 = vld [vmem:[#allocation5 + $0xac8] sm:$0xff] }
  0xbf   :  { %1654 = vmatprep.subr.mxu1 %v388_v45  ;;  %1620 = vmatpush3.msra.mxu0 %v340_v46  ;;  %v438_v43 = vld [vmem:[#allocation5 + $0xb50] sm:$0xff]  ;;  %v453_v45 = vld [vmem:[#allocation5 + $0xbc8] sm:$0xff] }
  0xc0   :  { %1655 = vmatpush3.msra.mxu1 %v372_v47  ;;  %1621 = vmatprep.subr.mxu0 %v355_v48  ;;  %v405_v46 = vld [vmem:[#allocation5 + $0xa48] sm:$0xff]  ;;  %v420_v48 = vld [vmem:[#allocation5 + $0xac0] sm:$0xff] }
  0xc1   :  { %1656 = vmatprep.subr.mxu1 %v387_v49  ;;  %1622 = vmatpush3.msra.mxu0 %v339_v50  ;;  %v437_v47 = vld [vmem:[#allocation5 + $0xb48] sm:$0xff]  ;;  %v452_v49 = vld [vmem:[#allocation5 + $0xbc0] sm:$0xff] }
  0xc2   :  { %1657 = vmatpush3.msra.mxu1 %v371_v51  ;;  %1623 = vmatprep.subr.mxu0 %v354_v52  ;;  %v404_v50 = vld [vmem:[#allocation5 + $0xa40] sm:$0xff]  ;;  %v419_v52 = vld [vmem:[#allocation5 + $0xab8] sm:$0xff] }
  0xc3   :  { %1658 = vmatprep.subr.mxu1 %v386_v53  ;;  %1624 = vmatpush3.msra.mxu0 %v338_v54  ;;  %v436_v51 = vld [vmem:[#allocation5 + $0xb40] sm:$0xff]  ;;  %v451_v53 = vld [vmem:[#allocation5 + $0xbb8] sm:$0xff] }
  0xc4   :  { %1659 = vmatpush3.msra.mxu1 %v370_v55  ;;  %1625 = vmatprep.subr.mxu0 %v353_v56  ;;  %v403_v54 = vld [vmem:[#allocation5 + $0xa38] sm:$0xff]  ;;  %v418_v56 = vld [vmem:[#allocation5 + $0xab0] sm:$0xff] }
  0xc5   :  { %1660 = vmatprep.subr.mxu1 %v385_v57  ;;  %1626 = vmatpush3.msra.mxu0 %v337_v58  ;;  %v435_v55 = vld [vmem:[#allocation5 + $0xb38] sm:$0xff]  ;;  %v450_v57 = vld [vmem:[#allocation5 + $0xbb0] sm:$0xff] }
  0xc6   :  { %1661 = vmatpush3.msra.mxu1 %v369_v59  ;;  %1627 = vmatprep.subr.mxu0 %v352_v60  ;;  %v402_v58 = vld [vmem:[#allocation5 + $0xa30] sm:$0xff]  ;;  %v417_v60 = vld [vmem:[#allocation5 + $0xaa8] sm:$0xff] }
  0xc7   :  { %1662 = vmatprep.subr.mxu1 %v384_v61  ;;  %1628 = vmatpush3.msra.mxu0 %v336_v62  ;;  %v434_v59 = vld [vmem:[#allocation5 + $0xb30] sm:$0xff]  ;;  %v449_v61 = vld [vmem:[#allocation5 + $0xba8] sm:$0xff] }
  0xc8   :  { %1663 = vmatpush3.msra.mxu1 %v368_v63  ;;  %1629 = vmatprep.subr.mxu0 %v351_v0  ;;  %v401_v62 = vld [vmem:[#allocation5 + $0xa28] sm:$0xff]  ;;  %v416_v0 = vld [vmem:[#allocation5 + $0xaa0] sm:$0xff] }
  0xc9   :  { %1664 = vmatprep.subr.mxu1 %v383_v1  ;;  %1630 = vmatpush3.msra.mxu0 %v335_v2  ;;  %v433_v63 = vld [vmem:[#allocation5 + $0xb28] sm:$0xff]  ;;  %v448_v1 = vld [vmem:[#allocation5 + $0xba0] sm:$0xff] }
  0xca   :  { %1665 = vmatpush3.msra.mxu1 %v367_v3  ;;  %1631 = vmatprep.subr.mxu0 %v350_v4  ;;  %v400_v2 = vld [vmem:[#allocation5 + $0xa20] sm:$0xff]  ;;  %v415_v4 = vld [vmem:[#allocation5 + $0xa98] sm:$0xff] }
  0xcb   :  { %1666 = vmatprep.subr.mxu1 %v382_v5  ;;  %1632 = vmatpush3.msra.mxu0 %v334_v6  ;;  %v432_v3 = vld [vmem:[#allocation5 + $0xb20] sm:$0xff]  ;;  %v447_v5 = vld [vmem:[#allocation5 + $0xb98] sm:$0xff] }
  0xcc   :  { %1667 = vmatpush3.msra.mxu1 %v366_v7  ;;  %1633 = vmatprep.subr.mxu0 %v349_v8  ;;  %v399_v6 = vld [vmem:[#allocation5 + $0xa18] sm:$0xff]  ;;  %v414_v8 = vld [vmem:[#allocation5 + $0xa90] sm:$0xff] }
  0xcd   :  { %1668 = vmatprep.subr.mxu1 %v381_v9  ;;  %1634 = vmatpush3.msra.mxu0 %v333_v10  ;;  %v431_v7 = vld [vmem:[#allocation5 + $0xb18] sm:$0xff]  ;;  %v446_v9 = vld [vmem:[#allocation5 + $0xb90] sm:$0xff] }
  0xce   :  { %1669 = vmatpush3.msra.mxu1 %v365_v11  ;;  %1635 = vmatprep.subr.mxu0 %v348_v12  ;;  %v398_v10 = vld [vmem:[#allocation5 + $0xa10] sm:$0xff]  ;;  %v413_v12 = vld [vmem:[#allocation5 + $0xa88] sm:$0xff] }
  0xcf   :  { %1670 = vmatprep.subr.mxu1 %v380_v13  ;;  %1636 = vmatpush3.msra.mxu0 %v332_v14  ;;  %v430_v11 = vld [vmem:[#allocation5 + $0xb10] sm:$0xff]  ;;  %v445_v13 = vld [vmem:[#allocation5 + $0xb88] sm:$0xff] }
  0xd0   :  { %1091 = vmatprep.mubr.f32.mxu0 %v69_v15  ;;  %1671 = vmatpush3.msra.mxu1 %v364_v16  ;;  %v397_v14 = vld [vmem:[#allocation5 + $0xa08] sm:$0xff]  ;;  %v412_v16 = vld [vmem:[#allocation5 + $0xa80] sm:$0xff] }
  0xd1   :  { %1092 = vmatmul.mubr.f32.vlgmr.msra.gmra.mxu0 %v68_v17  ;;  %1161 = vmatprep.mubr.f32.mxu1 %v71_v18  ;;  %v429_v15 = vld [vmem:[#allocation5 + $0xb08] sm:$0xff]  ;;  %v444_v17 = vld [vmem:[#allocation5 + $0xb80] sm:$0xff] }
  0xd2   :  { %1675 = vmatprep.subr.mxu0 %v427_v19  ;;  %1710 = vmatprep.subr.mxu1 %v459_v20  ;;  %v396_v18 = vld [vmem:[#allocation5 + $0xa00] sm:$0xff]  ;;  %v73_v19 = vld [vmem:[#allocation2 + $0xa8] sm:$0xff] }
  0xd3   :  { %1162 = vmatmul.mubr.f32.vlgmr.msra.gmra.mxu1 %v70_v21  ;;  %1676 = vmatpush3.msra.mxu0 %v411_v22  ;;  %v428_v20 = vld [vmem:[#allocation5 + $0xb00] sm:$0xff]  ;;  %v75_v21 = vld [vmem:[#allocation2 + $0xb8] sm:$0xff] }
  0xd4   :  { %1711 = vmatpush3.msra.mxu1 %v443_v23  ;;  %1677 = vmatprep.subr.mxu0 %v426_v24  ;;  %v72_v22 = vld [vmem:[#allocation2 + $0xa0] sm:$0xff]  ;;  %v74_v23 = vld [vmem:[#allocation2 + $0xb0] sm:$0xff] }
  0xd5   :  { %1712 = vmatprep.subr.mxu1 %v458_v25  ;;  %1678 = vmatpush3.msra.mxu0 %v410_v26 }
  0xd6   :  { %1713 = vmatpush3.msra.mxu1 %v442_v27  ;;  %1679 = vmatprep.subr.mxu0 %v425_v28 }
  0xd7   :  { %1714 = vmatprep.subr.mxu1 %v457_v29  ;;  %1680 = vmatpush3.msra.mxu0 %v409_v30  ;;  %v1324_v29 = vld [vmem:[#allocation7] ss:$0 sm:$0xff] }
  0xd8   :  { %1715 = vmatpush3.msra.mxu1 %v441_v31  ;;  %1681 = vmatprep.subr.mxu0 %v424_v32 }
  0xd9   :  { %1716 = vmatprep.subr.mxu1 %v456_v33  ;;  %1682 = vmatpush3.msra.mxu0 %v408_v34 }
  0xda   :  { %1717 = vmatpush3.msra.mxu1 %v440_v35  ;;  %1683 = vmatprep.subr.mxu0 %v423_v36 }
  0xdb   :  { %1718 = vmatprep.subr.mxu1 %v455_v37  ;;  %1684 = vmatpush3.msra.mxu0 %v407_v38 }
  0xdc   :  { %1719 = vmatpush3.msra.mxu1 %v439_v39  ;;  %1685 = vmatprep.subr.mxu0 %v422_v40 }
  0xdd   :  { %1720 = vmatprep.subr.mxu1 %v454_v41  ;;  %1686 = vmatpush3.msra.mxu0 %v406_v42 }
  0xde   :  { %1721 = vmatpush3.msra.mxu1 %v438_v43  ;;  %1687 = vmatprep.subr.mxu0 %v421_v44 }
  0xdf   :  { %1722 = vmatprep.subr.mxu1 %v453_v45  ;;  %1688 = vmatpush3.msra.mxu0 %v405_v46 }
  0xe0   :  { %1723 = vmatpush3.msra.mxu1 %v437_v47  ;;  %1689 = vmatprep.subr.mxu0 %v420_v48 }
  0xe1   :  { %1724 = vmatprep.subr.mxu1 %v452_v49  ;;  %1690 = vmatpush3.msra.mxu0 %v404_v50 }
  0xe2   :  { %1725 = vmatpush3.msra.mxu1 %v436_v51  ;;  %1691 = vmatprep.subr.mxu0 %v419_v52 }
  0xe3   :  { %1726 = vmatprep.subr.mxu1 %v451_v53  ;;  %1692 = vmatpush3.msra.mxu0 %v403_v54 }
  0xe4   :  { %1727 = vmatpush3.msra.mxu1 %v435_v55  ;;  %1693 = vmatprep.subr.mxu0 %v418_v56 }
  0xe5   :  { %1728 = vmatprep.subr.mxu1 %v450_v57  ;;  %1694 = vmatpush3.msra.mxu0 %v402_v58 }
  0xe6   :  { %1729 = vmatpush3.msra.mxu1 %v434_v59  ;;  %1695 = vmatprep.subr.mxu0 %v417_v60 }
  0xe7   :  { %1730 = vmatprep.subr.mxu1 %v449_v61  ;;  %1696 = vmatpush3.msra.mxu0 %v401_v62 }
  0xe8   :  { %1731 = vmatpush3.msra.mxu1 %v433_v63  ;;  %1697 = vmatprep.subr.mxu0 %v416_v0 }
  0xe9   :  { %1732 = vmatprep.subr.mxu1 %v448_v1  ;;  %1698 = vmatpush3.msra.mxu0 %v400_v2 }
  0xea   :  { %1733 = vmatpush3.msra.mxu1 %v432_v3  ;;  %1699 = vmatprep.subr.mxu0 %v415_v4 }
  0xeb   :  { %1734 = vmatprep.subr.mxu1 %v447_v5  ;;  %1700 = vmatpush3.msra.mxu0 %v399_v6 }
  0xec   :  { %1735 = vmatpush3.msra.mxu1 %v431_v7  ;;  %1701 = vmatprep.subr.mxu0 %v414_v8 }
  0xed   :  { %1736 = vmatprep.subr.mxu1 %v446_v9  ;;  %1702 = vmatpush3.msra.mxu0 %v398_v10 }
  0xee   :  { %1737 = vmatpush3.msra.mxu1 %v430_v11  ;;  %1703 = vmatprep.subr.mxu0 %v413_v12 }
  0xef   :  { %1738 = vmatprep.subr.mxu1 %v445_v13  ;;  %1704 = vmatpush3.msra.mxu0 %v397_v14 }
  0xf0   :  { %1739 = vmatpush3.msra.mxu1 %v429_v15  ;;  %1705 = vmatprep.subr.mxu0 %v412_v16 }
  0xf1   :  { %1740 = vmatprep.subr.mxu1 %v444_v17  ;;  %1706 = vmatpush3.msra.mxu0 %v396_v18 }
  0xf2   :  { %1231 = vmatprep.mubr.f32.mxu0 %v73_v19  ;;  %1741 = vmatpush3.msra.mxu1 %v428_v20 }
  0xf3   :  { %1301 = vmatprep.mubr.f32.mxu1 %v75_v21  ;;  %1232 = vmatmul.mubr.f32.vlgmr.msra.gmra.mxu0 %v72_v22 }
  0xf4   :  { %1302 = vmatmul.mubr.f32.vlgmr.msra.gmra.mxu1 %v74_v23 }
 0x109   :  { %v1357_v24 = vpop.f32.mrf.mxu0 }
 0x10b   :  { %v1392_v25 = vpop.f32.mrf.mxu1  ;;  %v1358_v26 = vpop.f32.mrf.mxu0 }
 0x10c   :  { %v1359_v28 = vadd.f32 %v1358_v26, %v1357_v24 }
 0x10d   :  { %v1393_v30 = vpop.f32.mrf.mxu1 }
 0x10e   :  { %v534_v33 = vadd.f32 %v1359_v28, %v1324_v29  ;;  %v1394_v34 = vadd.f32 %v1393_v30, %v1392_v25 }
 0x110   :  { %v604_v38 = vadd.f32 %v1394_v34, %v534_v33 }
 0x12b   :  { %v1427_v27 = vpop.f32.mrf.mxu0 }
 0x12d   :  { %v1462_v31 = vpop.f32.mrf.mxu1  ;;  %v1428_v32 = vpop.f32.mrf.mxu0 }
 0x12e   :  { %v1429_v36 = vadd.f32 %v1428_v32, %v1427_v27 }
 0x12f   :  { %v1463_v37 = vpop.f32.mrf.mxu1 }
 0x130   :  { %v674_v41 = vadd.f32 %v1429_v36, %v604_v38  ;;  %v1464_v42 = vadd.f32 %v1463_v37, %v1462_v31 }
 0x132   :  { %v744_v46 = vadd.f32 %v1464_v42, %v674_v41 }
 0x14d   :  { %v1497_v35 = vpop.f32.mrf.mxu0 }
 0x14f   :  { %v1532_v39 = vpop.f32.mrf.mxu1  ;;  %v1498_v40 = vpop.f32.mrf.mxu0 }
 0x150   :  { %v1499_v44 = vadd.f32 %v1498_v40, %v1497_v35 }
 0x151   :  { %v1533_v45 = vpop.f32.mrf.mxu1 }
 0x152   :  { %v814_v49 = vadd.f32 %v1499_v44, %v744_v46  ;;  %v1534_v50 = vadd.f32 %v1533_v45, %v1532_v39 }
 0x154   :  { %v884_v54 = vadd.f32 %v1534_v50, %v814_v49 }
 0x16f   :  { %v1567_v43 = vpop.f32.mrf.mxu0 }
 0x171   :  { %v1602_v47 = vpop.f32.mrf.mxu1  ;;  %v1568_v48 = vpop.f32.mrf.mxu0 }
 0x172   :  { %v1569_v52 = vadd.f32 %v1568_v48, %v1567_v43 }
 0x173   :  { %v1603_v53 = vpop.f32.mrf.mxu1 }
 0x174   :  { %v954_v57 = vadd.f32 %v1569_v52, %v884_v54  ;;  %v1604_v58 = vadd.f32 %v1603_v53, %v1602_v47 }
 0x176   :  { %v1024_v61 = vadd.f32 %v1604_v58, %v954_v57 }
 0x191   :  { %v1637_v51 = vpop.f32.mrf.mxu0 }
 0x193   :  { %v1672_v55 = vpop.f32.mrf.mxu1  ;;  %v1638_v56 = vpop.f32.mrf.mxu0 }
 0x194   :  { %v1639_v59 = vadd.f32 %v1638_v56, %v1637_v51 }
 0x195   :  { %v1673_v60 = vpop.f32.mrf.mxu1 }
 0x196   :  { %v1094_v62 = vadd.f32 %v1639_v59, %v1024_v61  ;;  %v1674_v63 = vadd.f32 %v1673_v60, %v1672_v55 }
 0x198   :  { %v1164_v4 = vadd.f32 %v1674_v63, %v1094_v62 }
 0x1b3   :  { %v1707_v0 = vpop.f32.mrf.mxu0 }
 0x1b4   :  { %v1742_v1 = vpop.f32.mrf.mxu1 }
 0x1b5   :  { %v1708_v2 = vpop.f32.mrf.mxu0 }
 0x1b6   :  { %v1743_v3 = vpop.f32.mrf.mxu1  ;;  %v1709_v5 = vadd.f32 %v1708_v2, %v1707_v0 }
 0x1b7   :  { %v1744_v7 = vadd.f32 %v1743_v3, %v1742_v1 }
 0x1b8   :  { %v1234_v6 = vadd.f32 %v1709_v5, %v1164_v4 }
 0x1ba   :  { %v1304_v8 = vadd.f32 %v1744_v7, %v1234_v6 }
 0x1bc   :  { %1307 = vst [vmem:[#allocation8] sm:$0xff] %v1304_v8 }
 0x1bd   :  { %1822 = shalt.err (!%p1819_p5)
}
 0x1be   :  { %1317 = dma.vmem_to_hbm [thread:$0]  %s1315_s2, 128, %s1878_s3, [#allocation4]  }
 0x1bf   :  { %1835 = dma.done.wait [#allocation4], 128  }
 0x1c0   :  { %1836 = vsyncadd [#allocation4], 4294967168 }
 0x1c1   :  { %1321 = vsyncpa [#allocation3], 1 }
 0x1c2   :  { %1322 = vsyncpa [#allocation6], 1 }
 0x1c3   :  { %1323 = vsyncpa [#allocation4], 1 }

</bundles_post_ra>
